<compile_context>
chip_gen: v7x
topology: tpu7x:2x2x1
jax: 0.10.0
libtpu: 0.0.40
codegen_flags: <defaults>
</compile_context>

<pallas_src>
import functools

import jax
import jax.numpy as jnp
from jax.experimental import pallas as pl
from jax.experimental.pallas import tpu as pltpu

_LANE = 128
_SUBLANE = 8


def _round_up(n, m):
    return (n + m - 1) // m * m


def markov_rnn_kernel(x_ref, h_ref, pi_ref,
                      w_ih_ref, w_hh_ref, e_pi_ref, s_h_ref,
                      w_out_t_ref, w_out_blk_ref,
                      packed_ref):
    """One invocation evaluates all K Markov-state RNN cells.

    Shapes (L = lane-padded state-slab width, multiple of 128; Bp = sublane-padded batch):
      x_ref:         (Bp, Nx)   padded input
      h_ref:         (Bp, Nh)   padded previous hidden state
      pi_ref:        (Bp, K)    padded belief
      w_ih_ref:      (Nx, L)    stacked W_ih^T, state k in cols [k*Nh, (k+1)*Nh)
      w_hh_ref:      (Nh, L)    stacked W_hh^T, same column layout
      e_pi_ref:      (K, L)     0/1 belief-expansion matrix (pi -> slab layout)
      s_h_ref:       (L, L)     sum-over-states selector, valid block [0:K*Nh, 0:Nh]
      w_out_t_ref:   (L, L)     W_out^T placed in block [0:Nh, 0:Ny]
      w_out_blk_ref: (L, L)     block-diagonal W_out^T in block [0:K*Nh, 0:K*Ny]
      packed_ref:    (4, Bp, L) packed outputs: [h_k slab, h_new, out_k slab, out]
    """
    # Fused per-state RNN cells: x @ W_ih^T + h_prev @ W_hh^T for all K states at once.
    pre = (jnp.dot(x_ref[...], w_ih_ref[...], preferred_element_type=jnp.float32)
           + jnp.dot(h_ref[...], w_hh_ref[...], preferred_element_type=jnp.float32))
    h_all = jnp.tanh(pre)                                          # (Bp, L); pad cols -> tanh(0)=0

    # Belief expanded to the slab layout in-kernel (no HBM repeat / DMA of pi_h).
    pi_h = jnp.dot(pi_ref[...], e_pi_ref[...],
                   preferred_element_type=jnp.float32)             # (Bp, L)

    # h_new = sum_k pi_k * h_k  (block-weighted slab followed by sum-over-states selector).
    h_new = jnp.dot(h_all * pi_h, s_h_ref[...],
                    preferred_element_type=jnp.float32)            # (Bp, L), valid [0:Nh)

    # Per-state outputs: out_k = h_k @ W_out^T (shared linear, block-diagonal weights).
    out_k = jnp.dot(h_all, w_out_blk_ref[...],
                    preferred_element_type=jnp.float32)            # (Bp, L), valid [0:K*Ny)

    # Mixed output exactly in PyTorch order: out = out_layer(h_new).
    out = jnp.dot(h_new, w_out_t_ref[...],
                  preferred_element_type=jnp.float32)              # (Bp, L), valid [0:Ny)

    # Single packed write-back (one output DMA).
    packed_ref[0] = h_all
    packed_ref[1] = h_new
    packed_ref[2] = out_k
    packed_ref[3] = out


def prepare_markov_rnn_params(w_ih, w_hh, w_out):
    """One-time parameter packing (hoisted out of the per-step forward path).

    w_ih: (K, Nh, Nx), w_hh: (K, Nh, Nh), w_out: (Ny, Nh) -> 6 resident slabs.
    """
    K, Nh, Nx = w_ih.shape
    Ny = w_out.shape[0]
    f32 = jnp.float32
    L = _round_up(max(K * Nh, K * Ny, Nh, Ny), _LANE)

    # Stacked, pre-transposed cell weights: column k*Nh + j <-> (state k, hidden unit j).
    w_ih_all = jnp.transpose(w_ih.astype(f32), (2, 0, 1)).reshape(Nx, K * Nh)
    w_hh_all = jnp.transpose(w_hh.astype(f32), (2, 0, 1)).reshape(Nh, K * Nh)
    w_ih_all = jnp.pad(w_ih_all, ((0, 0), (0, L - K * Nh)))        # (Nx, L)
    w_hh_all = jnp.pad(w_hh_all, ((0, 0), (0, L - K * Nh)))        # (Nh, L)

    # Belief expansion: e_pi[k, k*Nh + j] = 1.
    e_pi = jnp.pad(jnp.kron(jnp.eye(K, dtype=f32), jnp.ones((1, Nh), f32)),
                   ((0, 0), (0, L - K * Nh)))                      # (K, L)

    # Sum-over-states selector: s_h[k*Nh + j, j] = 1.
    s_h = jnp.zeros((L, L), f32).at[:K * Nh, :Nh].set(
        jnp.tile(jnp.eye(Nh, dtype=f32), (K, 1)))                  # (L, L)

    # Output layer: plain W_out^T (for out = out_layer(h_new)) ...
    w_out_t = jnp.zeros((L, L), f32).at[:Nh, :Ny].set(w_out.T.astype(f32))
    # ... and block-diagonal W_out^T (for the per-state out_k slab).
    # TODO(synk): block-diagonal output weights scale as K^2; for large K/Ny switch to
    # per-state matmuls on slab slices (or a K grid axis) instead of one padded slab.
    w_out_blk = jnp.zeros((L, L), f32).at[:K * Nh, :K * Ny].set(
        jnp.kron(jnp.eye(K, dtype=f32), w_out.T.astype(f32)))

    return (w_ih_all, w_hh_all, e_pi, s_h, w_out_t, w_out_blk)


@functools.partial(jax.jit, static_argnames=("out_dim",))
def markov_rnn_forward(x, h_prev, pi, params, out_dim):
    """Per-step forward. `params` comes from prepare_markov_rnn_params (one-time)."""
    w_ih_all, w_hh_all, e_pi, s_h, w_out_t, w_out_blk = params
    B, Nx = x.shape
    Nh = h_prev.shape[1]
    K = pi.shape[1]
    Ny = out_dim
    L = w_ih_all.shape[1]
    f32 = jnp.float32

    # Sublane padding: fill all 8 f32 sublanes -> unmasked stores, full MXU M tile.
    Bp = _round_up(max(B, _SUBLANE), _SUBLANE)
    x_p = jnp.pad(x.astype(f32), ((0, Bp - B), (0, 0)))
    h_p = jnp.pad(h_prev.astype(f32), ((0, Bp - B), (0, 0)))
    pi_p = jnp.pad(pi.astype(f32), ((0, Bp - B), (0, 0)))

    flops = 2 * Bp * (Nx * L + Nh * L + K * L + 3 * L * L)
    bytes_accessed = 4 * (Bp * (Nx + Nh + K) + (Nx + Nh + K) * L + 3 * L * L
                          + 4 * Bp * L)
    cost = pl.CostEstimate(flops=flops, transcendentals=Bp * L,
                           bytes_accessed=bytes_accessed)

    vmem_spec = pl.BlockSpec(memory_space=pltpu.MemorySpace.VMEM)
    packed = pl.pallas_call(
        markov_rnn_kernel,
        out_shape=jax.ShapeDtypeStruct((4, Bp, L), f32),
        in_specs=[vmem_spec] * 9,
        out_specs=vmem_spec,
        cost_estimate=cost,
    )(x_p, h_p, pi_p, w_ih_all, w_hh_all, e_pi, s_h, w_out_t, w_out_blk)

    # HBM-side glue: slice the packed slab back to PyTorch conventions.
    h_k = jnp.transpose(packed[0, :B, :K * Nh].reshape(B, K, Nh), (0, 2, 1))    # (B, Nh, K)
    h_new = packed[1, :B, :Nh]                                                  # (B, Nh)
    out_k = jnp.transpose(packed[2, :B, :K * Ny].reshape(B, K, Ny), (0, 2, 1))  # (B, Ny, K)
    out = packed[3, :B, :Ny]                                                    # (B, Ny)
    return out, [h_new], out_k, [h_k]


def ref_forward(x, h_prev, pi, w_ih, w_hh, w_out):
    """Pure-JAX reference mirroring the PyTorch forward."""
    h_k = jnp.tanh(jnp.einsum('bi,khi->bhk', x, w_ih)
                   + jnp.einsum('bg,khg->bhk', h_prev, w_hh))      # (B, Nh, K)
    out_k = jnp.einsum('bhk,yh->byk', h_k, w_out)                  # (B, Ny, K)
    h_new = jnp.einsum('bhk,bk->bh', h_k, pi)                      # (B, Nh)
    out = h_new @ w_out.T                                          # (B, Ny)
    return out, h_new, out_k, h_k


if __name__ == "__main__":
    # Small shapes consistent with the module (num_state=3, modest hidden size).
    B, Nx, Nh, Ny, K = 2, 8, 32, 4, 3
    init_std = 0.1

    key = jax.random.PRNGKey(0)
    k_wih, k_whh, k_wout, k_x, k_pi = jax.random.split(key, 5)

    # Deterministic synthetic parameters (K RNNCells + shared Linear, no biases).
    # TODO(synk): psi_ (Dirichlet transition prior) is not used in forward(); omitted.
    w_ih = jax.random.normal(k_wih, (K, Nh, Nx), jnp.float32) * init_std
    w_hh = jax.random.normal(k_whh, (K, Nh, Nh), jnp.float32) * init_std
    w_out = jax.random.normal(k_wout, (Ny, Nh), jnp.float32) * init_std

    # Inputs: x (B, Nx), initial hidden state zeros (B, Nh), normalized belief (B, K).
    x = jax.random.normal(k_x, (B, Nx), jnp.float32)
    h_prev = jnp.zeros((B, Nh), jnp.float32)
    pi_raw = jax.random.uniform(k_pi, (B, K), jnp.float32)
    pi = pi_raw / jnp.sum(pi_raw, axis=1, keepdims=True)

    # One-time packed-parameter preparation (not on the per-step path).
    params = prepare_markov_rnn_params(w_ih, w_hh, w_out)
    params = jax.tree_util.tree_map(lambda a: a.block_until_ready(), params)

    out, states, out_k, states_k = markov_rnn_forward(x, h_prev, pi, params, Ny)
    jax.block_until_ready(out)

    ref_out, ref_h, ref_out_k, ref_h_k = ref_forward(x, h_prev, pi, w_ih, w_hh, w_out)
    assert out.shape == (B, Ny) and states[0].shape == (B, Nh)
    assert out_k.shape == (B, Ny, K) and states_k[0].shape == (B, Nh, K)
    assert jnp.allclose(out, ref_out, rtol=1e-3, atol=1e-4)
    assert jnp.allclose(states[0], ref_h, rtol=1e-3, atol=1e-4)
    assert jnp.allclose(out_k, ref_out_k, rtol=1e-3, atol=1e-4)
    assert jnp.allclose(states_k[0], ref_h_k, rtol=1e-3, atol=1e-4)

    print("KERNEL_OK")
</pallas_src>

<mosaic_0001>
module attributes {stable_mosaic.version = 11 : i64} {
  func.func @markov_rnn_kernel(%arg0: memref<8x8xf32, #tpu.memory_space<vmem>>, %arg1: memref<8x32xf32, #tpu.memory_space<vmem>>, %arg2: memref<8x3xf32, #tpu.memory_space<vmem>>, %arg3: memref<8x128xf32, #tpu.memory_space<vmem>>, %arg4: memref<32x128xf32, #tpu.memory_space<vmem>>, %arg5: memref<3x128xf32, #tpu.memory_space<vmem>>, %arg6: memref<128x128xf32, #tpu.memory_space<vmem>>, %arg7: memref<128x128xf32, #tpu.memory_space<vmem>>, %arg8: memref<128x128xf32, #tpu.memory_space<vmem>>, %arg9: memref<4x8x128xf32, #tpu.memory_space<vmem>>) attributes {dimension_semantics = [], scalar_prefetch = 0 : i64, scratch_operands = 0 : i64, tpu.core_type = #tpu.core_type<tc>} {
    %c0 = arith.constant 0 : index
    %c0_0 = arith.constant 0 : index
    %0 = vector.load %arg0[%c0, %c0_0] : memref<8x8xf32, #tpu.memory_space<vmem>>, vector<8x8xf32>
    %c0_1 = arith.constant 0 : index
    %c0_2 = arith.constant 0 : index
    %1 = vector.load %arg3[%c0_1, %c0_2] : memref<8x128xf32, #tpu.memory_space<vmem>>, vector<8x128xf32>
    %cst = arith.constant dense<0.000000e+00> : vector<8x128xf32>
    %2 = tpu.matmul %0, %1, %cst {dimension_numbers = #tpu.dot_dimension_numbers<[1], [0], [0], [1], [0, 0, 1, 1], [], []>} : vector<8x8xf32>, vector<8x128xf32>, vector<8x128xf32> -> vector<8x128xf32>
    %c0_3 = arith.constant 0 : index
    %c0_4 = arith.constant 0 : index
    %3 = vector.load %arg1[%c0_3, %c0_4] : memref<8x32xf32, #tpu.memory_space<vmem>>, vector<8x32xf32>
    %c0_5 = arith.constant 0 : index
    %c0_6 = arith.constant 0 : index
    %4 = vector.load %arg4[%c0_5, %c0_6] : memref<32x128xf32, #tpu.memory_space<vmem>>, vector<32x128xf32>
    %cst_7 = arith.constant dense<0.000000e+00> : vector<8x128xf32>
    %5 = tpu.matmul %3, %4, %cst_7 {dimension_numbers = #tpu.dot_dimension_numbers<[1], [0], [0], [1], [0, 0, 1, 1], [], []>} : vector<8x32xf32>, vector<32x128xf32>, vector<8x128xf32> -> vector<8x128xf32>
    %6 = arith.addf %2, %5 : vector<8x128xf32>
    %7 = math.tanh %6 : vector<8x128xf32>
    %c0_8 = arith.constant 0 : index
    %c0_9 = arith.constant 0 : index
    %8 = vector.load %arg2[%c0_8, %c0_9] : memref<8x3xf32, #tpu.memory_space<vmem>>, vector<8x3xf32>
    %c0_10 = arith.constant 0 : index
    %c0_11 = arith.constant 0 : index
    %9 = vector.load %arg5[%c0_10, %c0_11] : memref<3x128xf32, #tpu.memory_space<vmem>>, vector<3x128xf32>
    %cst_12 = arith.constant dense<0.000000e+00> : vector<8x128xf32>
    %10 = tpu.matmul %8, %9, %cst_12 {dimension_numbers = #tpu.dot_dimension_numbers<[1], [0], [0], [1], [0, 0, 1, 1], [], []>} : vector<8x3xf32>, vector<3x128xf32>, vector<8x128xf32> -> vector<8x128xf32>
    %11 = arith.mulf %7, %10 : vector<8x128xf32>
    %c0_13 = arith.constant 0 : index
    %c0_14 = arith.constant 0 : index
    %12 = vector.load %arg6[%c0_13, %c0_14] : memref<128x128xf32, #tpu.memory_space<vmem>>, vector<128x128xf32>
    %cst_15 = arith.constant dense<0.000000e+00> : vector<8x128xf32>
    %13 = tpu.matmul %11, %12, %cst_15 {dimension_numbers = #tpu.dot_dimension_numbers<[1], [0], [0], [1], [0, 0, 1, 1], [], []>} : vector<8x128xf32>, vector<128x128xf32>, vector<8x128xf32> -> vector<8x128xf32>
    %c0_16 = arith.constant 0 : index
    %c0_17 = arith.constant 0 : index
    %14 = vector.load %arg8[%c0_16, %c0_17] : memref<128x128xf32, #tpu.memory_space<vmem>>, vector<128x128xf32>
    %cst_18 = arith.constant dense<0.000000e+00> : vector<8x128xf32>
    %15 = tpu.matmul %7, %14, %cst_18 {dimension_numbers = #tpu.dot_dimension_numbers<[1], [0], [0], [1], [0, 0, 1, 1], [], []>} : vector<8x128xf32>, vector<128x128xf32>, vector<8x128xf32> -> vector<8x128xf32>
    %c0_19 = arith.constant 0 : index
    %c0_20 = arith.constant 0 : index
    %16 = vector.load %arg7[%c0_19, %c0_20] : memref<128x128xf32, #tpu.memory_space<vmem>>, vector<128x128xf32>
    %cst_21 = arith.constant dense<0.000000e+00> : vector<8x128xf32>
    %17 = tpu.matmul %13, %16, %cst_21 {dimension_numbers = #tpu.dot_dimension_numbers<[1], [0], [0], [1], [0, 0, 1, 1], [], []>} : vector<8x128xf32>, vector<128x128xf32>, vector<8x128xf32> -> vector<8x128xf32>
    %c0_22 = arith.constant 0 : index
    %c0_23 = arith.constant 0 : index
    %c0_24 = arith.constant 0 : index
    %18 = vector.load %arg9[%c0_22, %c0_23, %c0_24] : memref<4x8x128xf32, #tpu.memory_space<vmem>>, vector<1x8x128xf32>
    %19 = vector.shape_cast %18 : vector<1x8x128xf32> to vector<8x128xf32>
    %20 = vector.shape_cast %7 : vector<8x128xf32> to vector<1x8x128xf32>
    tpu.vector_store %arg9[%c0_22, %c0_23, %c0_24], %20 {strides = array<i32>} : memref<4x8x128xf32, #tpu.memory_space<vmem>>, vector<1x8x128xf32>,
    %c1 = arith.constant 1 : index
    %c0_25 = arith.constant 0 : index
    %c0_26 = arith.constant 0 : index
    %21 = vector.load %arg9[%c1, %c0_25, %c0_26] : memref<4x8x128xf32, #tpu.memory_space<vmem>>, vector<1x8x128xf32>
    %22 = vector.shape_cast %21 : vector<1x8x128xf32> to vector<8x128xf32>
    %23 = vector.shape_cast %13 : vector<8x128xf32> to vector<1x8x128xf32>
    tpu.vector_store %arg9[%c1, %c0_25, %c0_26], %23 {strides = array<i32>} : memref<4x8x128xf32, #tpu.memory_space<vmem>>, vector<1x8x128xf32>,
    %c2 = arith.constant 2 : index
    %c0_27 = arith.constant 0 : index
    %c0_28 = arith.constant 0 : index
    %24 = vector.load %arg9[%c2, %c0_27, %c0_28] : memref<4x8x128xf32, #tpu.memory_space<vmem>>, vector<1x8x128xf32>
    %25 = vector.shape_cast %24 : vector<1x8x128xf32> to vector<8x128xf32>
    %26 = vector.shape_cast %15 : vector<8x128xf32> to vector<1x8x128xf32>
    tpu.vector_store %arg9[%c2, %c0_27, %c0_28], %26 {strides = array<i32>} : memref<4x8x128xf32, #tpu.memory_space<vmem>>, vector<1x8x128xf32>,
    %c3 = arith.constant 3 : index
    %c0_29 = arith.constant 0 : index
    %c0_30 = arith.constant 0 : index
    %27 = vector.load %arg9[%c3, %c0_29, %c0_30] : memref<4x8x128xf32, #tpu.memory_space<vmem>>, vector<1x8x128xf32>
    %28 = vector.shape_cast %27 : vector<1x8x128xf32> to vector<8x128xf32>
    %29 = vector.shape_cast %17 : vector<8x128xf32> to vector<1x8x128xf32>
    tpu.vector_store %arg9[%c3, %c0_29, %c0_30], %29 {strides = array<i32>} : memref<4x8x128xf32, #tpu.memory_space<vmem>>, vector<1x8x128xf32>,
    return
  }
}

</mosaic_0001>

<bundles_post_ra>
// kernel: squeeze.6
= control target key start
LH: loop header
LB: loop body
LE: loop exit
PB: predicated region body
PF: predicated region fallthrough
CT: control target
= control target key end

     0   :  { %vm7_vm0 = vcmask 31744   ;;  %s36_s8 = smov 120   ;;  %s56_s0 = inlined_call_operand.vmem [shape: f32[1,2,12], index: 0, kind: input, shape index: {}]   ;;  %s57_s1 = inlined_call_operand.vmem [shape: f32[2,3,4], index: 1, kind: output, shape index: {}]  }
   0x1   :  { %v4_v0 = vld [vmem:[%s56_s0] sm:$0x3]  ;;  %s35_s0 = smov 124  }
   0x2   :  { %5 = vst [vmem:[#allocation1] sm:$0x3] %v4_v0 }
   0x9   :  { %v9_v1 = vld [vmem:[#allocation1] sm:$0x3]  }
   0xa   :  { %v6_v2 = vld [vmem:[#allocation1] sm:$0x3]   ;;  %10 = vrot.lane.b32.xlu0 %v9_v1, %s35_s0 }
   0xb   :  { %8 = vst.msk [vmem:[#allocation0] ss:$8 sm:$0x3] %vm7_vm0, %v6_v2   ;;  %v15_v3 = vld [vmem:[#allocation1] sm:$0x3]  }
   0xe   :  { %16 = vrot.lane.b32.xlu0 %v15_v3, %s36_s8 }
  0x7c   :  { %v11_v4 = vpop.permute.xlu0 %10  }
  0x7d   :  { %14 = vst.msk [vmem:[#allocation0 + $0x1] ss:$8 sm:$0x3] %vm7_vm0, %v11_v4  }
  0x80   :  { %v17_v5 = vpop.permute.xlu0 %16  }
  0x81   :  { %20 = vst.msk [vmem:[#allocation0 + $0x2] ss:$8 sm:$0x3] %vm7_vm0, %v17_v5  }
  0x88   :  { %v24_v6 = vld [vmem:[#allocation0] sm:$0xf]  ;;  %v28_v7 = vld [vmem:[#allocation0 + $0x8] sm:$0xf] }
  0x89   :  { %26 = vst [vmem:[%s57_s1] sm:$0xf] %v24_v6  ;;  %32 = vst [vmem:[%s57_s1 + $0x4] sm:$0xf] %v28_v7 }

// kernel: squeeze.4
= control target key start
LH: loop header
LB: loop body
LE: loop exit
PB: predicated region body
PF: predicated region fallthrough
CT: control target
= control target key end

     0   :  { %vm7_vm0 = vcmask 261120   ;;  %s36_s8 = smov 64   ;;  %s56_s0 = inlined_call_operand.vmem [shape: f32[1,2,96], index: 0, kind: input, shape index: {}]   ;;  %s57_s1 = inlined_call_operand.vmem [shape: f32[2,3,32], index: 1, kind: output, shape index: {}]  }
   0x1   :  { %v4_v0 = vld [vmem:[%s56_s0] sm:$0x3]  ;;  %s35_s0 = smov 96  }
   0x2   :  { %5 = vst [vmem:[#allocation1] sm:$0x3] %v4_v0 }
   0x9   :  { %v9_v1 = vld [vmem:[#allocation1] sm:$0x3]  }
   0xa   :  { %v6_v2 = vld [vmem:[#allocation1] sm:$0x3]   ;;  %10 = vrot.lane.b32.xlu0 %v9_v1, %s35_s0 }
   0xb   :  { %8 = vst.msk [vmem:[#allocation0] ss:$8 sm:$0x3] %vm7_vm0, %v6_v2   ;;  %v15_v3 = vld [vmem:[#allocation1] sm:$0x3]  }
   0xe   :  { %16 = vrot.lane.b32.xlu0 %v15_v3, %s36_s8 }
  0x7c   :  { %v11_v4 = vpop.permute.xlu0 %10  }
  0x7d   :  { %14 = vst.msk [vmem:[#allocation0 + $0x1] ss:$8 sm:$0x3] %vm7_vm0, %v11_v4  }
  0x80   :  { %v17_v5 = vpop.permute.xlu0 %16  }
  0x81   :  { %20 = vst.msk [vmem:[#allocation0 + $0x2] ss:$8 sm:$0x3] %vm7_vm0, %v17_v5  }
  0x88   :  { %v24_v6 = vld [vmem:[#allocation0] sm:$0xf]  ;;  %v28_v7 = vld [vmem:[#allocation0 + $0x8] sm:$0xf] }
  0x89   :  { %26 = vst [vmem:[%s57_s1] sm:$0xf] %v24_v6  ;;  %32 = vst [vmem:[%s57_s1 + $0x4] sm:$0xf] %v28_v7 }

// kernel: markov_rnn_forward.1
= control target key start
LH: loop header
LB: loop body
LE: loop exit
PB: predicated region body
PF: predicated region fallthrough
CT: control target
= control target key end

     0   :  { %14 = vsyncpa [#allocation3], 0  ;;  %s1123_s0 = inlined_call_operand.vmem [shape: f32[8,8], index: 0, kind: input, shape index: {}]   ;;  %s1124_s1 = inlined_call_operand.vmem [shape: f32[8,32], index: 1, kind: input, shape index: {}]   ;;  %s1125_s2 = inlined_call_operand.vmem [shape: f32[8,3], index: 2, kind: input, shape index: {}]   ;;  %s1126_s3 = inlined_call_operand.vmem [shape: f32[8,128], index: 3, kind: input, shape index: {}]   ;;  %s1127_s4 = inlined_call_operand.vmem [shape: f32[32,128], index: 4, kind: input, shape index: {}]   ;;  %s1128_s5 = inlined_call_operand.vmem [shape: f32[3,128], index: 5, kind: input, shape index: {}]   ;;  %s1129_s6 = inlined_call_operand.hbm [shape: f32[128,128], index: 6, kind: input, shape index: {}]   ;;  %s1130_s7 = inlined_call_operand.hbm [shape: f32[128,128], index: 7, kind: input, shape index: {}]   ;;  %s1131_s8 = inlined_call_operand.hbm [shape: f32[128,128], index: 8, kind: input, shape index: {}]   ;;  %s1132_s9 = inlined_call_operand.vmem [shape: f32[4,8,128], index: 9, kind: output, shape index: {}]  }
   0x1   :  { %15 = vsyncpa [#allocation5], 0  ;;  %s934_s30 = smov [#allocation4]   ;;  %s935_s11 = smov [#allocation2]  }
   0x2   :  { %s45_s10 = sshll.u32 %s934_s30, 4  ;;  %s33_s12 = sshll.u32 %s935_s11, 4  ;;  %s46_s10 = int_to_ptr.vmem [resolvable:$true] %s45_s10  ;;  %s992_s12 = int_to_ptr.vmem [resolvable:$true] %s33_s12 }
   0x3   :  { %s864_s15 = scalar_lea.hbm %s1130_s7, 2048 }
   0x4   :  { %p865_p0 = scmp.ne.s32.totalorder %s1130_s7, %s864_s15  ;;  %p868_p1 = scmp.lt.u32.totalorder %s864_s15, %s1130_s7 }
   0x6   :  { %p870_p2 = pnand %p868_p1, %p865_p0 }
   0x8   :  { %873 = shalt.err (!%p870_p2)
}
   0x9   :  { %s874_s20 = scalar_lea.vmem %s46_s10, 2048  ;;  %p879_p4 = scmp.lt.s32.totalorder %s46_s10, %s46_s10 }
   0xa   :  { %p875_p3 = scmp.ne.s32.totalorder %s46_s10, %s874_s20  ;;  %p880_p5 = scmp.lt.s32.totalorder %s874_s20, %s874_s20 }
   0xc   :  { %p881_p6 = por %p880_p5, %p879_p4 }
   0xe   :  { %p882_p7 = pnand %p881_p6, %p875_p3 }
  0x10   :  { %885 = shalt.err (!%p882_p7)
}
  0x11   :  { %s936_s21 = smov 128   ;;  %s937_s22 = smov 8  }
  0x12   :  { %51 = dma.hbm_to_vmem [thread:$0]  %s1130_s7, 2048, %s46_s10, [#allocation5], %s936_s21, %s936_s21, %s937_s22  }
  0x13   :  { %s886_s27 = scalar_lea.hbm %s1129_s6, 2048 }
  0x14   :  { %p887_p8 = scmp.ne.s32.totalorder %s1129_s6, %s886_s27  ;;  %p890_p9 = scmp.lt.u32.totalorder %s886_s27, %s1129_s6 }
  0x16   :  { %p892_p10 = pnand %p890_p9, %p887_p8 }
  0x18   :  { %895 = shalt.err (!%p892_p10)
}
  0x19   :  { %s896_s13 = scalar_lea.vmem %s992_s12, 2048  ;;  %p901_p12 = scmp.lt.s32.totalorder %s992_s12, %s992_s12 }
  0x1a   :  { %p897_p11 = scmp.ne.s32.totalorder %s992_s12, %s896_s13  ;;  %p902_p13 = scmp.lt.s32.totalorder %s896_s13, %s896_s13 }
  0x1c   :  { %p903_p0 = por %p902_p13, %p901_p12 }
  0x1e   :  { %p904_p1 = pnand %p903_p0, %p897_p11 }
  0x20   :  { %907 = shalt.err (!%p904_p1)
}
  0x21   :  { %39 = dma.hbm_to_vmem [thread:$0]  %s1129_s6, 2048, %s992_s12, [#allocation3], %s936_s21, %s936_s21, %s937_s22  }
  0x22   :  { %s938_s14 = smov [#allocation6]   ;;  %s908_s18 = scalar_lea.hbm %s1131_s8, 2048 }
  0x23   :  { %s57_s15 = sshll.u32 %s938_s14, 4  ;;  %p909_p2 = scmp.ne.s32.totalorder %s1131_s8, %s908_s18  ;;  %s58_s15 = int_to_ptr.vmem [resolvable:$true] %s57_s15 }
  0x24   :  { %p912_p3 = scmp.lt.u32.totalorder %s908_s18, %s1131_s8 }
  0x26   :  { %p914_p4 = pnand %p912_p3, %p909_p2 }
  0x28   :  { %917 = shalt.err (!%p914_p4)
}
  0x29   :  { %s918_s25 = scalar_lea.vmem %s58_s15, 2048  ;;  %p923_p6 = scmp.lt.s32.totalorder %s58_s15, %s58_s15 }
  0x2a   :  { %p919_p5 = scmp.ne.s32.totalorder %s58_s15, %s918_s25  ;;  %p924_p7 = scmp.lt.s32.totalorder %s918_s25, %s918_s25 }
  0x2c   :  { %p925_p8 = por %p924_p7, %p923_p6 }
  0x2e   :  { %p926_p9 = pnand %p925_p8, %p919_p5 }
  0x30   :  { %929 = shalt.err (!%p926_p9)
}
  0x31   :  { %63 = dma.hbm_to_vmem [thread:$0]  %s1131_s8, 2048, %s58_s15, [#allocation5], %s936_s21, %s936_s21, %s937_s22  }
  0x32   :  { %930 = dma.done.wait [#allocation3], 2048  }
  0x33   :  { %931 = vsyncadd [#allocation3], 4294965248 }
  0x34   :  { %932 = dma.done.wait [#allocation5], 4096  }
  0x35   :  { %933 = vsyncadd [#allocation5], 4294963200  ;;  %v939_v0 = vmov 0.0|0.0   ;;  %vm940_vm0 = vmmov 0   ;;  %v941_v1 = vmov 0.0   ;;  %v76_v2 = vld [vmem:[%s1127_s4] sm:$0xff] }
  0x36   :  { %774 = vmatprep.subr.bf16.mxu0 %v939_v0  ;;  %656 = vmatprep.mubr.msk.f32.mxu0 %vm940_vm0, %v941_v1  ;;  %v77_v3 = vld [vmem:[%s1127_s4 + $0x8] sm:$0xff]  ;;  %v78_v4 = vld [vmem:[%s1127_s4 + $0x10] sm:$0xff]  ;;  %v79_v6 = vld [vmem:[%s1127_s4 + $0x18] sm:$0xff]  ;;  %vm80_vm1 = vcmask 261120   ;;  %vm154_vm2 = vcmask 64512   ;;  %vm235_vm3 = vcmask 1042432  }
  0x37   :  { %780 = vmatprep.subr.bf16.mxu1 %v939_v0  ;;  %701 = vmatprep.mubr.msk.f32.mxu1 %vm940_vm0, %v941_v1  ;;  %v775_v5 = vpack.c.bf16 %v77_v3, %v76_v2  ;;  %v778_v7 = vpack.c.bf16 %v79_v6, %v78_v4  ;;  %v310_v8 = vld [vmem:[#allocation2] sm:$0xff]  ;;  %v311_v9 = vld [vmem:[#allocation2 + $0x8] sm:$0xff]  ;;  %v312_v11 = vld [vmem:[#allocation2 + $0x10] sm:$0xff]  ;;  %vm231_vm4 = vcmask 23552  }
  0x38   :  { %v781_v10 = vpack.c.bf16 %v311_v9, %v310_v8  ;;  %v313_v12 = vld [vmem:[#allocation2 + $0x18] sm:$0xff]  ;;  %v75_v13 = vld [vmem:[%s1124_s1] sm:$0xff]  ;;  %v315_v17 = vld [vmem:[#allocation2 + $0x28] sm:$0xff] }
  0x39   :  { %776 = vmatpush3.bf16.msra.mxu0 %v775_v5  ;;  %v74_v14 = vld [vmem:[%s1126_s3] sm:$0xff]  ;;  %v784_v15 = vpack.c.bf16 %v313_v12, %v312_v11  ;;  %v316_v19 = vld [vmem:[#allocation2 + $0x30] sm:$0xff]  ;;  %v317_v20 = vld [vmem:[#allocation2 + $0x38] sm:$0xff] }
  0x3a   :  { %777 = vmatprep.subr.bf16.mxu0 %v939_v0  ;;  %782 = vmatpush3.bf16.msra.mxu1 %v781_v10  ;;  %v314_v16 = vld [vmem:[#allocation2 + $0x20] sm:$0xff]  ;;  %v397_v24 = vld [vmem:[#allocation6 + $0x8] sm:$0xff]  ;;  %v790_v25 = vpack.c.bf16 %v317_v20, %v316_v19  ;;  %v398_v30 = vld [vmem:[#allocation6 + $0x10] sm:$0xff] }
  0x3b   :  { %783 = vmatprep.subr.bf16.mxu1 %v939_v0  ;;  %v787_v18 = vpack.c.bf16 %v315_v17, %v314_v16  ;;  %v73_v21 = vld [vmem:[%s1123_s0] sm:$0xff]  ;;  %v319_v27 = vld [vmem:[#allocation2 + $0x48] sm:$0xff]  ;;  %v399_v31 = vld [vmem:[#allocation6 + $0x18] sm:$0xff] }
  0x3c   :  { %v230_v22 = vld [vmem:[%s1128_s5] sm:$0x7]  ;;  %v808_v33 = vpack.c.bf16 %v399_v31, %v398_v30  ;;  %v401_v35 = vld [vmem:[#allocation6 + $0x28] sm:$0xff]  ;;  %v402_v37 = vld [vmem:[#allocation6 + $0x30] sm:$0xff] }
  0x3d   :  { %779 = vmatpush3.bf16.msra.mxu0 %v778_v7  ;;  %v396_v23 = vld [vmem:[#allocation6] sm:$0xff]  ;;  %v403_v38 = vld [vmem:[#allocation6 + $0x38] sm:$0xff]  ;;  %v405_v41 = vld [vmem:[#allocation6 + $0x48] sm:$0xff] }
  0x3e   :  { %659 = vmatprep.subr.mxu0 %v941_v1  ;;  %785 = vmatpush3.bf16.msra.mxu1 %v784_v15  ;;  %v318_v26 = vld [vmem:[#allocation2 + $0x40] sm:$0xff]  ;;  %v805_v29 = vpack.c.bf16 %v397_v24, %v396_v23  ;;  %v814_v39 = vpack.c.bf16 %v403_v38, %v402_v37  ;;  %v406_v43 = vld [vmem:[#allocation6 + $0x50] sm:$0xff]  ;;  %v407_v44 = vld [vmem:[#allocation6 + $0x58] sm:$0xff] }
  0x3f   :  { %786 = vmatprep.subr.bf16.mxu1 %v939_v0  ;;  %v229_v28 = vld [vmem:[%s1125_s2] sm:$0xff]  ;;  %v793_v32 = vpack.c.bf16 %v319_v27, %v318_v26  ;;  %v820_v45 = vpack.c.bf16 %v407_v44, %v406_v43  ;;  %v320_v46 = vld [vmem:[#allocation2 + $0x50] sm:$0xff]  ;;  %v321_v47 = vld [vmem:[#allocation2 + $0x58] sm:$0xff] }
  0x40   :  { %657 = vmatmul.mubr.msk.f32.vlgmr.msra.gmra.mrb[0].mxu0 %vm80_vm1, %v75_v13  ;;  %v400_v34 = vld [vmem:[#allocation6 + $0x20] sm:$0xff]  ;;  %v796_v48 = vpack.c.bf16 %v321_v47, %v320_v46  ;;  %v409_v50 = vld [vmem:[#allocation6 + $0x68] sm:$0xff]  ;;  %v410_v55 = vld [vmem:[#allocation6 + $0x70] sm:$0xff] }
  0x41   :  { %660 = vmatpush3.msra.mxu0 %v74_v14  ;;  %661 = vmatprep.mubr.msk.f32.mxu0 %vm940_vm0, %v941_v1  ;;  %v811_v36 = vpack.c.bf16 %v401_v35, %v400_v34  ;;  %v404_v40 = vld [vmem:[#allocation6 + $0x40] sm:$0xff]  ;;  %v323_v53 = vld [vmem:[#allocation2 + $0x68] sm:$0xff]  ;;  %v411_v56 = vld [vmem:[#allocation6 + $0x78] sm:$0xff] }
  0x42   :  { %664 = vmatprep.subr.mxu0 %v941_v1  ;;  %788 = vmatpush3.bf16.msra.mxu1 %v787_v18  ;;  %v817_v42 = vpack.c.bf16 %v405_v41, %v404_v40  ;;  %v408_v49 = vld [vmem:[#allocation6 + $0x60] sm:$0xff]  ;;  %v826_v57 = vpack.c.bf16 %v411_v56, %v410_v55  ;;  %v324_v58 = vld [vmem:[#allocation2 + $0x70] sm:$0xff]  ;;  %v325_v59 = vld [vmem:[#allocation2 + $0x78] sm:$0xff] }
  0x43   :  { %789 = vmatprep.subr.bf16.mxu1 %v939_v0  ;;  %v823_v51 = vpack.c.bf16 %v409_v50, %v408_v49  ;;  %v322_v52 = vld [vmem:[#allocation2 + $0x60] sm:$0xff]  ;;  %v802_v60 = vpack.c.bf16 %v325_v59, %v324_v58  ;;  %v483_v4 = vld [vmem:[#allocation4 + $0x8] sm:$0xff]  ;;  %v484_v8 = vld [vmem:[#allocation4 + $0x10] sm:$0xff] }
  0x44   :  { %v799_v54 = vpack.c.bf16 %v323_v53, %v322_v52  ;;  %v482_v3 = vld [vmem:[#allocation4] sm:$0xff]  ;;  %v485_v9 = vld [vmem:[#allocation4 + $0x18] sm:$0xff]  ;;  %v487_v12 = vld [vmem:[#allocation4 + $0x28] sm:$0xff] }
  0x45   :  { %v829_v6 = vpack.c.bf16 %v483_v4, %v482_v3  ;;  %v832_v10 = vpack.c.bf16 %v485_v9, %v484_v8  ;;  %v486_v11 = vld [vmem:[#allocation4 + $0x20] sm:$0xff]  ;;  %v488_v14 = vld [vmem:[#allocation4 + $0x30] sm:$0xff]  ;;  %v489_v15 = vld [vmem:[#allocation4 + $0x38] sm:$0xff] }
  0x46   :  { %791 = vmatpush3.bf16.msra.mxu1 %v790_v25  ;;  %v835_v13 = vpack.c.bf16 %v487_v12, %v486_v11  ;;  %v838_v16 = vpack.c.bf16 %v489_v15, %v488_v14  ;;  %v490_v17 = vld [vmem:[#allocation4 + $0x40] sm:$0xff]  ;;  %v491_v18 = vld [vmem:[#allocation4 + $0x48] sm:$0xff]  ;;  %v493_v20 = vld [vmem:[#allocation4 + $0x58] sm:$0xff] }
  0x47   :  { %792 = vmatprep.subr.bf16.mxu1 %v939_v0  ;;  %v841_v19 = vpack.c.bf16 %v491_v18, %v490_v17  ;;  %v495_v23 = vld [vmem:[#allocation4 + $0x68] sm:$0xff]  ;;  %v496_v25 = vld [vmem:[#allocation4 + $0x70] sm:$0xff]  ;;  %v497_v26 = vld [vmem:[#allocation4 + $0x78] sm:$0xff] }
  0x48   :  { %662 = vmatmul.mubr.msk.f32.vlgmr.msra.gmra.mrb[0].mxu0 %vm154_vm2, %v73_v21  ;;  %v850_v27 = vpack.c.bf16 %v497_v26, %v496_v25 }
  0x49   :  { %665 = vmatpush3.msk.msra.mxu0 %vm235_vm3, %v230_v22  ;;  %666 = vmatprep.mubr.msk.f32.mxu0 %vm940_vm0, %v941_v1  ;;  %v494_v22 = vld [vmem:[#allocation4 + $0x60] sm:$0xff] }
  0x4a   :  { %804 = vmatprep.subr.bf16.mxu0 %v939_v0  ;;  %794 = vmatpush3.bf16.msra.mxu1 %v793_v32  ;;  %v847_v24 = vpack.c.bf16 %v495_v23, %v494_v22 }
  0x4b   :  { %795 = vmatprep.subr.bf16.mxu1 %v939_v0 }
  0x4c   :  { %667 = vmatmul.mubr.msk.f32.vlgmr.msra.gmra.mrb[2].mxu0 %vm231_vm4, %v229_v28 }
  0x4d   :  { %806 = vmatpush3.bf16.msra.mxu0 %v805_v29  ;;  %736 = vmatprep.mubr.msk.f32.mxu0 %vm940_vm0, %v941_v1 }
  0x4e   :  { %807 = vmatprep.subr.bf16.mxu0 %v939_v0  ;;  %797 = vmatpush3.bf16.msra.mxu1 %v796_v48 }
  0x4f   :  { %798 = vmatprep.subr.bf16.mxu1 %v939_v0 }
  0x51   :  { %809 = vmatpush3.bf16.msra.mxu0 %v808_v33 }
  0x52   :  { %810 = vmatprep.subr.bf16.mxu0 %v939_v0  ;;  %800 = vmatpush3.bf16.msra.mxu1 %v799_v54 }
  0x53   :  { %801 = vmatprep.subr.bf16.mxu1 %v939_v0 }
  0x55   :  { %812 = vmatpush3.bf16.msra.mxu0 %v811_v36 }
  0x56   :  { %813 = vmatprep.subr.bf16.mxu0 %v939_v0  ;;  %803 = vmatpush3.bf16.msra.mxu1 %v802_v60 }
  0x57   :  { %828 = vmatprep.subr.bf16.mxu1 %v939_v0 }
  0x59   :  { %815 = vmatpush3.bf16.msra.mxu0 %v814_v39 }
  0x5a   :  { %816 = vmatprep.subr.bf16.mxu0 %v939_v0 }
  0x5d   :  { %818 = vmatpush3.bf16.msra.mxu0 %v817_v42 }
  0x5e   :  { %819 = vmatprep.subr.bf16.mxu0 %v939_v0 }
  0x61   :  { %821 = vmatpush3.bf16.msra.mxu0 %v820_v45 }
  0x62   :  { %822 = vmatprep.subr.bf16.mxu0 %v939_v0 }
  0x65   :  { %824 = vmatpush3.bf16.msra.mxu0 %v823_v51 }
  0x66   :  { %825 = vmatprep.subr.bf16.mxu0 %v939_v0 }
  0x69   :  { %827 = vmatpush3.bf16.msra.mxu0 %v826_v57 }
 0x11b   :  { %v224_v61 = vpop.f32.mrb[0].mxu0 }
 0x11c   :  { %862 = vtanh.f32 %v224_v61  ;;  %v663_v62 = vpop.f32.mrb[1].mxu0 }
 0x11f   :  { %v305_v63 = vpop.f32.mrb[2].mxu0 }
 0x120   :  { %v668_v2 = vpop.f32.mrb[3].mxu0 }
 0x126   :  { %v863_v5 = vpop.eup %862 }
 0x127   :  { %568 = vst [vmem:[%s1132_s9] sm:$0xff] %v863_v5  ;;  %v309_v7 = vmul.f32 %v863_v5, %v305_v63  ;;  %737 = vmatmul.mubr.f32.vlgmr.msra.gmra.mrb[4].mxu0 %v863_v5 }
 0x129   :  { %702 = vmatmul.mubr.f32.vlgmr.msra.gmra.mrb[0].mxu1 %v309_v7 }
 0x12a   :  { %830 = vmatpush3.bf16.msra.mxu1 %v829_v6  ;;  %771 = vmatprep.mubr.msk.f32.mxu1 %vm940_vm0, %v941_v1  ;;  %v492_v1 = vld [vmem:[#allocation4 + $0x50] sm:$0xff] }
 0x12b   :  { %831 = vmatprep.subr.bf16.mxu1 %v939_v0  ;;  %v844_v21 = vpack.c.bf16 %v493_v20, %v492_v1 }
 0x12e   :  { %833 = vmatpush3.bf16.msra.mxu1 %v832_v10 }
 0x12f   :  { %834 = vmatprep.subr.bf16.mxu1 %v939_v0 }
 0x132   :  { %836 = vmatpush3.bf16.msra.mxu1 %v835_v13 }
 0x133   :  { %837 = vmatprep.subr.bf16.mxu1 %v939_v0 }
 0x136   :  { %839 = vmatpush3.bf16.msra.mxu1 %v838_v16 }
 0x137   :  { %840 = vmatprep.subr.bf16.mxu1 %v939_v0 }
 0x13a   :  { %842 = vmatpush3.bf16.msra.mxu1 %v841_v19 }
 0x13b   :  { %843 = vmatprep.subr.bf16.mxu1 %v939_v0 }
 0x13e   :  { %845 = vmatpush3.bf16.msra.mxu1 %v844_v21 }
 0x13f   :  { %846 = vmatprep.subr.bf16.mxu1 %v939_v0 }
 0x142   :  { %848 = vmatpush3.bf16.msra.mxu1 %v847_v24 }
 0x143   :  { %849 = vmatprep.subr.bf16.mxu1 %v939_v0 }
 0x146   :  { %851 = vmatpush3.bf16.msra.mxu1 %v850_v27 }
 0x1fa   :  { %v478_v28 = vpop.f32.mrb[4].mxu0 }
 0x1fb   :  { %586 = vst [vmem:[%s1132_s9 + $0x10] sm:$0xff] %v478_v28  ;;  %v738_v29 = vpop.f32.mrb[5].mxu0 }
 0x1fc   :  { %v392_v30 = vpop.f32.mrb[0].mxu1 }
 0x1fd   :  { %585 = vst [vmem:[%s1132_s9 + $0x8] sm:$0xff] %v392_v30  ;;  %v703_v31 = vpop.f32.mrb[1].mxu1  ;;  %772 = vmatmul.mubr.f32.vlgmr.msra.gmra.mrb[2].mxu1 %v392_v30 }
 0x2d0   :  { %v564_v32 = vpop.f32.mrb[2].mxu1 }
 0x2d1   :  { %587 = vst [vmem:[%s1132_s9 + $0x18] sm:$0xff] %v564_v32  ;;  %v773_v0 = vpop.f32.mrb[3].mxu1 }
 0x2d2   :  { %579 = vsyncpa [#allocation3], 1 }
 0x2d3   :  { %580 = vsyncpa [#allocation5], 1 }

</bundles_post_ra>
